<compile_context>
chip_gen: v7x
topology: tpu7x:2x2x1
jax: 0.10.0
libtpu: 0.0.40
codegen_flags: <defaults>
</compile_context>

<pallas_src>
import functools
import math

import jax
import jax.numpy as jnp
from jax.experimental import pallas as pl
from jax.experimental.pallas import tpu as pltpu

KSIZE = 7
PAD = 3
HALO = 8          # 8-row (sublane-aligned) halo block fetched from neighbours
EPS = 1e-6


def _round_up(x, m):
    return (x + m - 1) // m * m


def _convnext_kernel(xc_ref, xp_ref, xn_ref,
                     wdw_ref, bdw_ref, w1_ref, b1_ref, w2_ref, b2_ref,
                     out_ref, win_ref, *, c_real, approx_gelu, bf16_pointwise):
    # xc_ref : (1, tT,  Cp)  current time tile (f32) -- also the residual
    # xp_ref : (1, 8,   Cp)  last 8 rows of previous tile (clamped at t==0)
    # xn_ref : (1, 8,   Cp)  first 8 rows of next tile (clamped at last tile)
    # wdw    : (7, Cp)       depthwise conv weight, wdw[k, c] = W[c, 0, k]
    # bdw/b2 : (1, Cp) ; b1 : (1, Ip)
    # w1     : (Cp, Ip) bf16  (LayerNorm affine folded in)
    # w2     : (Ip, Cp) bf16  (layer-scale gamma folded in)
    # out    : (1, tT, Cp)
    # win    : (tT + 16, Cp)  VMEM scratch conv window
    t = pl.program_id(1)
    nt = pl.num_programs(1)

    xc = xc_ref[0]                                    # (tT, Cp)
    tT, _ = xc.shape

    # Assemble the conv window in scratch; out-of-sequence halo rows are zeroed
    # (== the conv's zero padding; valid because PAD <= HALO and padded time
    # rows of x_pad are zero).
    win_ref[:HALO, :] = jnp.where(t == 0, 0.0, 1.0) * xp_ref[0]
    win_ref[HALO:HALO + tT, :] = xc
    win_ref[HALO + tT:HALO + tT + HALO, :] = (
        jnp.where(t == nt - 1, 0.0, 1.0) * xn_ref[0])

    # --- depthwise 1D conv, kernel 7, pad 3 (taps as static ref slices) ---
    base = HALO - PAD                                  # 5
    dw = win_ref[base:base + tT, :] * wdw_ref[0, :]    # seed with k=0 tap
    for k in range(1, KSIZE):                          # static unroll
        dw = dw + win_ref[base + k:base + k + tT, :] * wdw_ref[k, :]
    dw = dw + bdw_ref[0]

    # --- LayerNorm stats over channels (eps=1e-6, biased variance), one pass ---
    inv_c = 1.0 / float(c_real)
    s1 = jnp.sum(dw, axis=-1, keepdims=True)
    s2 = jnp.sum(dw * dw, axis=-1, keepdims=True)
    mean = s1 * inv_c
    var = jnp.maximum(s2 * inv_c - mean * mean, 0.0)   # guard cancellation
    xn = (dw - mean) * jax.lax.rsqrt(var + EPS)        # affine folded into w1/b1

    # --- pwconv1 (bf16 MXU, f32 accumulate) ---
    h = jnp.dot(xn.astype(jnp.bfloat16), w1_ref[...],
                preferred_element_type=jnp.float32)

    if bf16_pointwise:
        # v6e/v7x only: bias-add + GELU on the (tT, Ip) slab in bf16 VALU, fed
        # straight into the second matmul.  Do NOT enable on v5e.
        h = h.astype(jnp.bfloat16) + b1_ref[0].astype(jnp.bfloat16)
    else:
        h = h + b1_ref[0]

    if approx_gelu:
        # sigmoid-approx GELU: the transcendental lands on the EUP slot.
        h = h * jax.nn.sigmoid(1.702 * h)
    else:
        # exact-erf GELU (matches PyTorch nn.GELU default).
        h = 0.5 * h * (1.0 + jax.lax.erf(h * (1.0 / math.sqrt(2.0))))

    if not bf16_pointwise:
        h = h.astype(jnp.bfloat16)

    # --- pwconv2 (bf16 MXU; gamma folded into w2/b2) + residual ---
    y = jnp.dot(h, w2_ref[...], preferred_element_type=jnp.float32)
    out_ref[0] = xc + (y + b2_ref[0])


def convnext_block_ntc(x_ntc, params, *, block_t=512,
                       approx_gelu=False, bf16_pointwise=False):
    """x_ntc: (B, T, C) float32, channels-last.  Returns (B, T, C)."""
    B, T, C = x_ntc.shape
    I = params["w1"].shape[1]

    # lane-dense channel / intermediate dims (multiples of 128)
    Cp = _round_up(C, 128)
    Ip = _round_up(I, 128)

    # time tile: multiple of HALO (=8 sublanes); large enough to amortize the
    # per-grid-step overhead and fill the MXU M dimension.
    tT = min(_round_up(block_t, HALO), _round_up(T, HALO))
    # give megacore (v7x: 2 TCs) at least 2 grid steps for single-batch inputs
    if B == 1 and _round_up(T, tT) // tT < 2 and T > HALO:
        tT = _round_up(-(-T // 2), HALO)
    Tp = _round_up(T, tT)
    nT = Tp // tT
    hb = tT // HALO                 # number of 8-row halo blocks per time tile
    last_hblock = Tp // HALO - 1

    # pad time to a tile multiple and channels to a lane multiple (padded rows
    # and channels are zero and sliced off afterwards)
    x_pad = jnp.pad(x_ntc, ((0, 0), (0, Tp - T), (0, Cp - C)))

    # Fold LayerNorm affine into pwconv1 and layer-scale gamma into pwconv2
    # (weight-only; const-folded at trace time -> zero kernel cost).
    lnw, lnb, gamma = params["lnw"][0], params["lnb"][0], params["gamma"][0]
    w1f = params["w1"] * lnw[:, None]
    b1f = lnb @ params["w1"] + params["b1"][0]
    w2f = params["w2"] * gamma[None, :]
    b2f = params["b2"][0] * gamma

    pc = ((0, 0), (0, Cp - C))
    wdw = jnp.pad(params["wdw"], pc)
    bdw = jnp.pad(params["bdw"], pc)
    b1 = jnp.pad(b1f[None, :], ((0, 0), (0, Ip - I)))
    b2 = jnp.pad(b2f[None, :], pc)
    w1 = jnp.pad(w1f, ((0, Cp - C), (0, Ip - I))).astype(jnp.bfloat16)
    w2 = jnp.pad(w2f, ((0, Ip - I), (0, Cp - C))).astype(jnp.bfloat16)

    # constant-index (weight) blocks; Pallas skips re-DMA when the block index
    # does not change between grid steps.  (On v7x with large C/I, single-
    # buffering these via pipeline_mode=pl.Buffered(1) reclaims the 2nd buffer.)
    const = lambda shape: pl.BlockSpec(shape, lambda b, t: (0,) * len(shape))

    grid_spec = pltpu.PrefetchScalarGridSpec(
        num_scalar_prefetch=0,
        grid=(B, nT),
        in_specs=[
            # current tile (also the residual)
            pl.BlockSpec((1, tT, Cp), lambda b, t: (b, t, 0)),
            # previous-tile halo: last 8 rows of tile t-1 (clamped at t==0)
            pl.BlockSpec((1, HALO, Cp),
                         lambda b, t: (b, jnp.maximum(t * hb - 1, 0), 0)),
            # next-tile halo: first 8 rows of tile t+1 (clamped at last tile)
            pl.BlockSpec((1, HALO, Cp),
                         lambda b, t: (b, jnp.minimum((t + 1) * hb, last_hblock), 0)),
            const((KSIZE, Cp)),   # dw weight
            const((1, Cp)),       # dw bias
            const((Cp, Ip)),      # w1 (bf16, LN affine folded)
            const((1, Ip)),       # b1 (LN bias folded)
            const((Ip, Cp)),      # w2 (bf16, gamma folded)
            const((1, Cp)),       # b2 (gamma folded)
        ],
        out_specs=pl.BlockSpec((1, tT, Cp), lambda b, t: (b, t, 0)),
        scratch_shapes=[pltpu.VMEM((tT + 2 * HALO, Cp), jnp.float32)],
    )

    flops = (4 * B * Tp * Cp * Ip            # two matmuls
             + 2 * B * Tp * Cp * KSIZE       # depthwise conv
             + 8 * B * Tp * Cp)              # LN / residual elementwise
    bytes_acc = (2 * B * Tp * Cp * 4                     # x in + out (f32)
                 + B * nT * 2 * HALO * Cp * 4            # halo re-reads
                 + 2 * Cp * Ip * 2                       # bf16 weights
                 + (4 * Cp + Ip + KSIZE * Cp) * 4)       # small params
    cost = pl.CostEstimate(flops=int(flops),
                           transcendentals=int(B * Tp * (Ip + 1)),
                           bytes_accessed=int(bytes_acc))

    # explicit VMEM budget from the actual tile footprint, clamped so v7x
    # (64 MiB per TC) keeps headroom; v5e/v6e (128 MiB) are comfortably inside.
    vmem_est = (4 * tT * Cp * 4              # xc + out, double-buffered f32
                + 8 * HALO * Cp * 4          # two halos, double-buffered
                + 4 * Cp * Ip * 2            # bf16 w1 + w2, double-buffered
                + (tT + 2 * HALO) * Cp * 4   # conv-window scratch
                + 2 * tT * Ip * 4            # h temp (+ slack)
                + 4 * tT * Cp * 4)           # dw / xn / y temps
    vmem_limit = int(min(max(2 * vmem_est, 32 * 1024 * 1024), 56 * 1024 * 1024))

    out_pad = pl.pallas_call(
        functools.partial(_convnext_kernel, c_real=C, approx_gelu=approx_gelu,
                          bf16_pointwise=bf16_pointwise),
        out_shape=jax.ShapeDtypeStruct((B, Tp, Cp), jnp.float32),
        grid_spec=grid_spec,
        compiler_params=pltpu.CompilerParams(
            dimension_semantics=("parallel", "parallel"),
            vmem_limit_bytes=vmem_limit),
        cost_estimate=cost,
    )(x_pad, x_pad, x_pad, wdw, bdw, w1, b1, w2, b2)

    return out_pad[:, :T, :C]


def convnext_block(x_nct, params, **kwargs):
    """PyTorch-layout entry: x_nct (B, C, T) float32 -> (B, C, T)."""
    out_ntc = convnext_block_ntc(jnp.transpose(x_nct, (0, 2, 1)), params, **kwargs)
    return jnp.transpose(out_ntc, (0, 2, 1))


def init_params(key, dim, intermediate_dim, layer_scale_init_value):
    ks = jax.random.split(key, 6)
    # dwconv: nn.Conv1d(dim, dim, 7, padding=3, groups=dim) -> weight (dim,1,7)
    wdw_torch = jax.random.normal(ks[0], (dim, 1, KSIZE), jnp.float32) * 0.1
    bdw = jax.random.normal(ks[1], (1, dim), jnp.float32) * 0.1
    # LayerNorm(dim): default init ones / zeros
    lnw = jnp.ones((1, dim), jnp.float32)
    lnb = jnp.zeros((1, dim), jnp.float32)
    # pwconv1: Linear(dim -> intermediate_dim); stored transposed (dim, I)
    w1 = jax.random.normal(ks[2], (dim, intermediate_dim), jnp.float32) * 0.1
    b1 = jax.random.normal(ks[3], (1, intermediate_dim), jnp.float32) * 0.1
    # pwconv2: Linear(intermediate_dim -> dim); stored transposed (I, dim)
    w2 = jax.random.normal(ks[4], (intermediate_dim, dim), jnp.float32) * 0.1
    b2 = jax.random.normal(ks[5], (1, dim), jnp.float32) * 0.1
    gamma = layer_scale_init_value * jnp.ones((1, dim), jnp.float32)
    # reshape dw weight to (7, dim): wdw[k, c] = W[c, 0, k]
    wdw = jnp.transpose(wdw_torch[:, 0, :], (1, 0))
    return dict(wdw=wdw, bdw=bdw, lnw=lnw, lnb=lnb,
                w1=w1, b1=b1, w2=w2, b2=b2, gamma=gamma)


def reference(x_nct, params):
    """Pure-JAX f32 reference (mirrors the PyTorch forward)."""
    x = jnp.transpose(x_nct, (0, 2, 1))                       # (B, T, C)
    xpad = jnp.pad(x, ((0, 0), (PAD, PAD), (0, 0)))
    T = x.shape[1]
    dw = sum(xpad[:, k:k + T, :] * params["wdw"][k] for k in range(KSIZE))
    dw = dw + params["bdw"][0]
    mean = jnp.mean(dw, axis=-1, keepdims=True)
    var = jnp.mean((dw - mean) ** 2, axis=-1, keepdims=True)
    xn = (dw - mean) / jnp.sqrt(var + EPS) * params["lnw"][0] + params["lnb"][0]
    h = xn @ params["w1"] + params["b1"][0]
    h = 0.5 * h * (1.0 + jax.lax.erf(h / math.sqrt(2.0)))
    y = h @ params["w2"] + params["b2"][0]
    y = params["gamma"][0] * y
    out = x + y
    return jnp.transpose(out, (0, 2, 1))


if __name__ == "__main__":
    B, DIM, T = 2, 32, 16
    INTERMEDIATE = 64
    LAYER_SCALE = 0.1

    key = jax.random.PRNGKey(0)
    kx, kp = jax.random.split(key)
    x = jax.random.normal(kx, (B, DIM, T), jnp.float32)        # (B, C, T)
    params = init_params(kp, DIM, INTERMEDIATE, LAYER_SCALE)

    out = convnext_block(x, params)                            # exact-erf GELU
    out = jax.block_until_ready(out)

    ref = reference(x, params)
    assert out.shape == (B, DIM, T)
    # bf16 MXU matmuls inside the kernel -> loosened tolerance vs f32 reference
    max_err = float(jnp.max(jnp.abs(out - ref)))
    assert jnp.allclose(out, ref, atol=2e-2, rtol=2e-2), max_err

    print("KERNEL_OK")
</pallas_src>

<mosaic_0001>
module attributes {stable_mosaic.version = 11 : i64} {
  func.func @_convnext_kernel(%arg0: i32, %arg1: i32, %arg2: memref<1x16x128xf32, #tpu.memory_space<vmem>>, %arg3: memref<1x8x128xf32, #tpu.memory_space<vmem>>, %arg4: memref<1x8x128xf32, #tpu.memory_space<vmem>>, %arg5: memref<7x128xf32, #tpu.memory_space<vmem>>, %arg6: memref<1x128xf32, #tpu.memory_space<vmem>>, %arg7: memref<128x128xbf16, #tpu.memory_space<vmem>>, %arg8: memref<1x128xf32, #tpu.memory_space<vmem>>, %arg9: memref<128x128xbf16, #tpu.memory_space<vmem>>, %arg10: memref<1x128xf32, #tpu.memory_space<vmem>>, %arg11: memref<1x16x128xf32, #tpu.memory_space<vmem>>, %arg12: memref<32x128xf32, #tpu.memory_space<vmem>>) attributes {dimension_semantics = [#tpu.dimension_semantics<parallel>, #tpu.dimension_semantics<parallel>], iteration_bounds = array<i64: 2, 1>, scalar_prefetch = 0 : i64, scratch_operands = 1 : i64, tpu.core_type = #tpu.core_type<tc>, window_params = [{transform_indices = @transform_0, window_bounds = array<i64: 1, 16, 128>}, {transform_indices = @transform_1, window_bounds = array<i64: 1, 8, 128>}, {transform_indices = @transform_2, window_bounds = array<i64: 1, 8, 128>}, {pipeline_mode = #tpu.pipeline_mode<synchronous>, transform_indices = @transform_3, window_bounds = array<i64: 7, 128>}, {pipeline_mode = #tpu.pipeline_mode<synchronous>, transform_indices = @transform_4, window_bounds = array<i64: 1, 128>}, {pipeline_mode = #tpu.pipeline_mode<synchronous>, transform_indices = @transform_5, window_bounds = array<i64: 128, 128>}, {pipeline_mode = #tpu.pipeline_mode<synchronous>, transform_indices = @transform_6, window_bounds = array<i64: 1, 128>}, {pipeline_mode = #tpu.pipeline_mode<synchronous>, transform_indices = @transform_7, window_bounds = array<i64: 128, 128>}, {pipeline_mode = #tpu.pipeline_mode<synchronous>, transform_indices = @transform_8, window_bounds = array<i64: 1, 128>}, {transform_indices = @transform_9, window_bounds = array<i64: 1, 16, 128>}]} {
    %c0 = arith.constant 0 : index
    %c0_0 = arith.constant 0 : index
    %c0_1 = arith.constant 0 : index
    %0 = vector.load %arg2[%c0, %c0_0, %c0_1] : memref<1x16x128xf32, #tpu.memory_space<vmem>>, vector<1x16x128xf32>
    %1 = vector.shape_cast %0 : vector<1x16x128xf32> to vector<16x128xf32>
    %c0_i32 = arith.constant 0 : i32
    %2 = arith.cmpi eq, %arg1, %c0_i32 : i32
    %cst = arith.constant 0.000000e+00 : f32
    %cst_2 = arith.constant 1.000000e+00 : f32
    %3 = arith.select %2, %cst, %cst_2 : f32
    %c0_3 = arith.constant 0 : index
    %c0_4 = arith.constant 0 : index
    %c0_5 = arith.constant 0 : index
    %4 = vector.load %arg3[%c0_3, %c0_4, %c0_5] : memref<1x8x128xf32, #tpu.memory_space<vmem>>, vector<1x8x128xf32>
    %5 = vector.shape_cast %4 : vector<1x8x128xf32> to vector<8x128xf32>
    %6 = vector.broadcast %3 : f32 to vector<8x128xf32>
    %7 = arith.mulf %6, %5 : vector<8x128xf32>
    %c0_6 = arith.constant 0 : index
    %c0_7 = arith.constant 0 : index
    %8 = vector.load %arg12[%c0_6, %c0_7] : memref<32x128xf32, #tpu.memory_space<vmem>>, vector<8x128xf32>
    tpu.vector_store %arg12[%c0_6, %c0_7], %7 {strides = array<i32>} : memref<32x128xf32, #tpu.memory_space<vmem>>, vector<8x128xf32>,
    %c8 = arith.constant 8 : index
    %c0_8 = arith.constant 0 : index
    %9 = vector.load %arg12[%c8, %c0_8] : memref<32x128xf32, #tpu.memory_space<vmem>>, vector<16x128xf32>
    tpu.vector_store %arg12[%c8, %c0_8], %1 {strides = array<i32>} : memref<32x128xf32, #tpu.memory_space<vmem>>, vector<16x128xf32>,
    %c0_i32_9 = arith.constant 0 : i32
    %10 = arith.cmpi eq, %arg1, %c0_i32_9 : i32
    %cst_10 = arith.constant 0.000000e+00 : f32
    %cst_11 = arith.constant 1.000000e+00 : f32
    %11 = arith.select %10, %cst_10, %cst_11 : f32
    %c0_12 = arith.constant 0 : index
    %c0_13 = arith.constant 0 : index
    %c0_14 = arith.constant 0 : index
    %12 = vector.load %arg4[%c0_12, %c0_13, %c0_14] : memref<1x8x128xf32, #tpu.memory_space<vmem>>, vector<1x8x128xf32>
    %13 = vector.shape_cast %12 : vector<1x8x128xf32> to vector<8x128xf32>
    %14 = vector.broadcast %11 : f32 to vector<8x128xf32>
    %15 = arith.mulf %14, %13 : vector<8x128xf32>
    %c24 = arith.constant 24 : index
    %c0_15 = arith.constant 0 : index
    %16 = vector.load %arg12[%c24, %c0_15] : memref<32x128xf32, #tpu.memory_space<vmem>>, vector<8x128xf32>
    tpu.vector_store %arg12[%c24, %c0_15], %15 {strides = array<i32>} : memref<32x128xf32, #tpu.memory_space<vmem>>, vector<8x128xf32>,
    %c5 = arith.constant 5 : index
    %c0_16 = arith.constant 0 : index
    %17 = vector.load %arg12[%c5, %c0_16] : memref<32x128xf32, #tpu.memory_space<vmem>>, vector<16x128xf32>
    %c0_17 = arith.constant 0 : index
    %c0_18 = arith.constant 0 : index
    %18 = vector.load %arg5[%c0_17, %c0_18] : memref<7x128xf32, #tpu.memory_space<vmem>>, vector<1x128xf32>
    %19 = vector.shape_cast %18 : vector<1x128xf32> to vector<128xf32>
    %20 = vector.shape_cast %19 : vector<128xf32> to vector<1x128xf32>
    %21 = vector.broadcast %20 : vector<1x128xf32> to vector<16x128xf32>
    %22 = arith.mulf %17, %21 : vector<16x128xf32>
    %c6 = arith.constant 6 : index
    %c0_19 = arith.constant 0 : index
    %23 = vector.load %arg12[%c6, %c0_19] : memref<32x128xf32, #tpu.memory_space<vmem>>, vector<16x128xf32>
    %c1 = arith.constant 1 : index
    %c0_20 = arith.constant 0 : index
    %24 = vector.load %arg5[%c1, %c0_20] : memref<7x128xf32, #tpu.memory_space<vmem>>, vector<1x128xf32>
    %25 = vector.shape_cast %24 : vector<1x128xf32> to vector<128xf32>
    %26 = vector.shape_cast %25 : vector<128xf32> to vector<1x128xf32>
    %27 = vector.broadcast %26 : vector<1x128xf32> to vector<16x128xf32>
    %28 = arith.mulf %23, %27 : vector<16x128xf32>
    %29 = arith.addf %22, %28 : vector<16x128xf32>
    %c7 = arith.constant 7 : index
    %c0_21 = arith.constant 0 : index
    %30 = vector.load %arg12[%c7, %c0_21] : memref<32x128xf32, #tpu.memory_space<vmem>>, vector<16x128xf32>
    %c2 = arith.constant 2 : index
    %c0_22 = arith.constant 0 : index
    %31 = vector.load %arg5[%c2, %c0_22] : memref<7x128xf32, #tpu.memory_space<vmem>>, vector<1x128xf32>
    %32 = vector.shape_cast %31 : vector<1x128xf32> to vector<128xf32>
    %33 = vector.shape_cast %32 : vector<128xf32> to vector<1x128xf32>
    %34 = vector.broadcast %33 : vector<1x128xf32> to vector<16x128xf32>
    %35 = arith.mulf %30, %34 : vector<16x128xf32>
    %36 = arith.addf %29, %35 : vector<16x128xf32>
    %c8_23 = arith.constant 8 : index
    %c0_24 = arith.constant 0 : index
    %37 = vector.load %arg12[%c8_23, %c0_24] : memref<32x128xf32, #tpu.memory_space<vmem>>, vector<16x128xf32>
    %c3 = arith.constant 3 : index
    %c0_25 = arith.constant 0 : index
    %38 = vector.load %arg5[%c3, %c0_25] : memref<7x128xf32, #tpu.memory_space<vmem>>, vector<1x128xf32>
    %39 = vector.shape_cast %38 : vector<1x128xf32> to vector<128xf32>
    %40 = vector.shape_cast %39 : vector<128xf32> to vector<1x128xf32>
    %41 = vector.broadcast %40 : vector<1x128xf32> to vector<16x128xf32>
    %42 = arith.mulf %37, %41 : vector<16x128xf32>
    %43 = arith.addf %36, %42 : vector<16x128xf32>
    %c9 = arith.constant 9 : index
    %c0_26 = arith.constant 0 : index
    %44 = vector.load %arg12[%c9, %c0_26] : memref<32x128xf32, #tpu.memory_space<vmem>>, vector<16x128xf32>
    %c4 = arith.constant 4 : index
    %c0_27 = arith.constant 0 : index
    %45 = vector.load %arg5[%c4, %c0_27] : memref<7x128xf32, #tpu.memory_space<vmem>>, vector<1x128xf32>
    %46 = vector.shape_cast %45 : vector<1x128xf32> to vector<128xf32>
    %47 = vector.shape_cast %46 : vector<128xf32> to vector<1x128xf32>
    %48 = vector.broadcast %47 : vector<1x128xf32> to vector<16x128xf32>
    %49 = arith.mulf %44, %48 : vector<16x128xf32>
    %50 = arith.addf %43, %49 : vector<16x128xf32>
    %c10 = arith.constant 10 : index
    %c0_28 = arith.constant 0 : index
    %51 = vector.load %arg12[%c10, %c0_28] : memref<32x128xf32, #tpu.memory_space<vmem>>, vector<16x128xf32>
    %c5_29 = arith.constant 5 : index
    %c0_30 = arith.constant 0 : index
    %52 = vector.load %arg5[%c5_29, %c0_30] : memref<7x128xf32, #tpu.memory_space<vmem>>, vector<1x128xf32>
    %53 = vector.shape_cast %52 : vector<1x128xf32> to vector<128xf32>
    %54 = vector.shape_cast %53 : vector<128xf32> to vector<1x128xf32>
    %55 = vector.broadcast %54 : vector<1x128xf32> to vector<16x128xf32>
    %56 = arith.mulf %51, %55 : vector<16x128xf32>
    %57 = arith.addf %50, %56 : vector<16x128xf32>
    %c11 = arith.constant 11 : index
    %c0_31 = arith.constant 0 : index
    %58 = vector.load %arg12[%c11, %c0_31] : memref<32x128xf32, #tpu.memory_space<vmem>>, vector<16x128xf32>
    %c6_32 = arith.constant 6 : index
    %c0_33 = arith.constant 0 : index
    %59 = vector.load %arg5[%c6_32, %c0_33] : memref<7x128xf32, #tpu.memory_space<vmem>>, vector<1x128xf32>
    %60 = vector.shape_cast %59 : vector<1x128xf32> to vector<128xf32>
    %61 = vector.shape_cast %60 : vector<128xf32> to vector<1x128xf32>
    %62 = vector.broadcast %61 : vector<1x128xf32> to vector<16x128xf32>
    %63 = arith.mulf %58, %62 : vector<16x128xf32>
    %64 = arith.addf %57, %63 : vector<16x128xf32>
    %c0_34 = arith.constant 0 : index
    %c0_35 = arith.constant 0 : index
    %65 = vector.load %arg6[%c0_34, %c0_35] : memref<1x128xf32, #tpu.memory_space<vmem>>, vector<1x128xf32>
    %66 = vector.shape_cast %65 : vector<1x128xf32> to vector<128xf32>
    %67 = vector.shape_cast %66 : vector<128xf32> to vector<1x128xf32>
    %68 = vector.broadcast %67 : vector<1x128xf32> to vector<16x128xf32>
    %69 = arith.addf %64, %68 : vector<16x128xf32>
    %cst_36 = arith.constant dense<0.000000e+00> : vector<16xf32>
    %70 = vector.multi_reduction <add>, %69, %cst_36 [1] : vector<16x128xf32> to vector<16xf32>
    %71 = vector.shape_cast %70 : vector<16xf32> to vector<16x1xf32>
    %72 = arith.mulf %69, %69 : vector<16x128xf32>
    %cst_37 = arith.constant dense<0.000000e+00> : vector<16xf32>
    %73 = vector.multi_reduction <add>, %72, %cst_37 [1] : vector<16x128xf32> to vector<16xf32>
    %74 = vector.shape_cast %73 : vector<16xf32> to vector<16x1xf32>
    %cst_38 = arith.constant 3.125000e-02 : f32
    %75 = vector.broadcast %cst_38 : f32 to vector<16x1xf32>
    %76 = arith.mulf %71, %75 : vector<16x1xf32>
    %cst_39 = arith.constant 3.125000e-02 : f32
    %77 = vector.broadcast %cst_39 : f32 to vector<16x1xf32>
    %78 = arith.mulf %74, %77 : vector<16x1xf32>
    %79 = arith.mulf %76, %76 : vector<16x1xf32>
    %80 = arith.subf %78, %79 : vector<16x1xf32>
    %cst_40 = arith.constant 0.000000e+00 : f32
    %81 = vector.broadcast %cst_40 : f32 to vector<16x1xf32>
    %82 = arith.maximumf %80, %81 : vector<16x1xf32>
    %83 = vector.broadcast %76 : vector<16x1xf32> to vector<16x128xf32>
    %84 = arith.subf %69, %83 : vector<16x128xf32>
    %cst_41 = arith.constant 9.99999997E-7 : f32
    %85 = vector.broadcast %cst_41 : f32 to vector<16x1xf32>
    %86 = arith.addf %82, %85 : vector<16x1xf32>
    %87 = math.rsqrt %86 : vector<16x1xf32>
    %88 = vector.broadcast %87 : vector<16x1xf32> to vector<16x128xf32>
    %89 = arith.mulf %84, %88 : vector<16x128xf32>
    %90 = arith.truncf %89 : vector<16x128xf32> to vector<16x128xbf16>
    %c0_42 = arith.constant 0 : index
    %c0_43 = arith.constant 0 : index
    %91 = vector.load %arg7[%c0_42, %c0_43] : memref<128x128xbf16, #tpu.memory_space<vmem>>, vector<128x128xbf16>
    %cst_44 = arith.constant dense<0.000000e+00> : vector<16x128xf32>
    %92 = tpu.matmul %90, %91, %cst_44 {dimension_numbers = #tpu.dot_dimension_numbers<[1], [0], [0], [1], [0, 0, 1, 1], [], []>} : vector<16x128xbf16>, vector<128x128xbf16>, vector<16x128xf32> -> vector<16x128xf32>
    %c0_45 = arith.constant 0 : index
    %c0_46 = arith.constant 0 : index
    %93 = vector.load %arg8[%c0_45, %c0_46] : memref<1x128xf32, #tpu.memory_space<vmem>>, vector<1x128xf32>
    %94 = vector.shape_cast %93 : vector<1x128xf32> to vector<128xf32>
    %95 = vector.shape_cast %94 : vector<128xf32> to vector<1x128xf32>
    %96 = vector.broadcast %95 : vector<1x128xf32> to vector<16x128xf32>
    %97 = arith.addf %92, %96 : vector<16x128xf32>
    %cst_47 = arith.constant 5.000000e-01 : f32
    %98 = vector.broadcast %cst_47 : f32 to vector<16x128xf32>
    %99 = arith.mulf %98, %97 : vector<16x128xf32>
    %cst_48 = arith.constant 0.707106769 : f32
    %100 = vector.broadcast %cst_48 : f32 to vector<16x128xf32>
    %101 = arith.mulf %97, %100 : vector<16x128xf32>
    %102 = math.erf %101 : vector<16x128xf32>
    %cst_49 = arith.constant 1.000000e+00 : f32
    %103 = vector.broadcast %cst_49 : f32 to vector<16x128xf32>
    %104 = arith.addf %103, %102 : vector<16x128xf32>
    %105 = arith.mulf %99, %104 : vector<16x128xf32>
    %106 = arith.truncf %105 : vector<16x128xf32> to vector<16x128xbf16>
    %c0_50 = arith.constant 0 : index
    %c0_51 = arith.constant 0 : index
    %107 = vector.load %arg9[%c0_50, %c0_51] : memref<128x128xbf16, #tpu.memory_space<vmem>>, vector<128x128xbf16>
    %cst_52 = arith.constant dense<0.000000e+00> : vector<16x128xf32>
    %108 = tpu.matmul %106, %107, %cst_52 {dimension_numbers = #tpu.dot_dimension_numbers<[1], [0], [0], [1], [0, 0, 1, 1], [], []>} : vector<16x128xbf16>, vector<128x128xbf16>, vector<16x128xf32> -> vector<16x128xf32>
    %c0_53 = arith.constant 0 : index
    %c0_54 = arith.constant 0 : index
    %109 = vector.load %arg10[%c0_53, %c0_54] : memref<1x128xf32, #tpu.memory_space<vmem>>, vector<1x128xf32>
    %110 = vector.shape_cast %109 : vector<1x128xf32> to vector<128xf32>
    %111 = vector.shape_cast %110 : vector<128xf32> to vector<1x128xf32>
    %112 = vector.broadcast %111 : vector<1x128xf32> to vector<16x128xf32>
    %113 = arith.addf %108, %112 : vector<16x128xf32>
    %114 = arith.addf %1, %113 : vector<16x128xf32>
    %c0_55 = arith.constant 0 : index
    %c0_56 = arith.constant 0 : index
    %c0_57 = arith.constant 0 : index
    %115 = vector.load %arg11[%c0_55, %c0_56, %c0_57] : memref<1x16x128xf32, #tpu.memory_space<vmem>>, vector<1x16x128xf32>
    %116 = vector.shape_cast %115 : vector<1x16x128xf32> to vector<16x128xf32>
    %117 = vector.shape_cast %114 : vector<16x128xf32> to vector<1x16x128xf32>
    tpu.vector_store %arg11[%c0_55, %c0_56, %c0_57], %117 {strides = array<i32>} : memref<1x16x128xf32, #tpu.memory_space<vmem>>, vector<1x16x128xf32>,
    return
  }
  func.func @transform_0(%arg0: i32, %arg1: i32) -> (i32, i32, i32) {
    %c0_i32 = arith.constant 0 : i32
    %c0_i32_0 = arith.constant 0 : i32
    return %arg0, %arg1, %c0_i32 : i32, i32, i32
  }
  func.func @transform_1(%arg0: i32, %arg1: i32) -> (i32, i32, i32) {
    %c2_i32 = arith.constant 2 : i32
    %0 = arith.muli %arg1, %c2_i32 : i32
    %c1_i32 = arith.constant 1 : i32
    %1 = arith.subi %0, %c1_i32 : i32
    %c0_i32 = arith.constant 0 : i32
    %2 = arith.maxsi %1, %c0_i32 : i32
    %c0_i32_0 = arith.constant 0 : i32
    %c0_i32_1 = arith.constant 0 : i32
    return %arg0, %2, %c0_i32_0 : i32, i32, i32
  }
  func.func @transform_2(%arg0: i32, %arg1: i32) -> (i32, i32, i32) {
    %c1_i32 = arith.constant 1 : i32
    %0 = arith.addi %arg1, %c1_i32 : i32
    %c2_i32 = arith.constant 2 : i32
    %1 = arith.muli %0, %c2_i32 : i32
    %c1_i32_0 = arith.constant 1 : i32
    %2 = arith.minsi %1, %c1_i32_0 : i32
    %c0_i32 = arith.constant 0 : i32
    %c0_i32_1 = arith.constant 0 : i32
    return %arg0, %2, %c0_i32 : i32, i32, i32
  }
  func.func @transform_3(%arg0: i32, %arg1: i32) -> (i32, i32) {
    %c0_i32 = arith.constant 0 : i32
    %c0_i32_0 = arith.constant 0 : i32
    %c0_i32_1 = arith.constant 0 : i32
    return %c0_i32, %c0_i32_0 : i32, i32
  }
  func.func @transform_4(%arg0: i32, %arg1: i32) -> (i32, i32) {
    %c0_i32 = arith.constant 0 : i32
    %c0_i32_0 = arith.constant 0 : i32
    %c0_i32_1 = arith.constant 0 : i32
    return %c0_i32, %c0_i32_0 : i32, i32
  }
  func.func @transform_5(%arg0: i32, %arg1: i32) -> (i32, i32) {
    %c0_i32 = arith.constant 0 : i32
    %c0_i32_0 = arith.constant 0 : i32
    %c0_i32_1 = arith.constant 0 : i32
    return %c0_i32, %c0_i32_0 : i32, i32
  }
  func.func @transform_6(%arg0: i32, %arg1: i32) -> (i32, i32) {
    %c0_i32 = arith.constant 0 : i32
    %c0_i32_0 = arith.constant 0 : i32
    %c0_i32_1 = arith.constant 0 : i32
    return %c0_i32, %c0_i32_0 : i32, i32
  }
  func.func @transform_7(%arg0: i32, %arg1: i32) -> (i32, i32) {
    %c0_i32 = arith.constant 0 : i32
    %c0_i32_0 = arith.constant 0 : i32
    %c0_i32_1 = arith.constant 0 : i32
    return %c0_i32, %c0_i32_0 : i32, i32
  }
  func.func @transform_8(%arg0: i32, %arg1: i32) -> (i32, i32) {
    %c0_i32 = arith.constant 0 : i32
    %c0_i32_0 = arith.constant 0 : i32
    %c0_i32_1 = arith.constant 0 : i32
    return %c0_i32, %c0_i32_0 : i32, i32
  }
  func.func @transform_9(%arg0: i32, %arg1: i32) -> (i32, i32, i32) {
    %c0_i32 = arith.constant 0 : i32
    %c0_i32_0 = arith.constant 0 : i32
    return %arg0, %arg1, %c0_i32 : i32, i32, i32
  }
}

</mosaic_0001>

<bundles_post_ra>
// kernel: tpu_custom_call.1
= control target key start
LH: loop header
LB: loop body
LE: loop exit
PB: predicated region body
PF: predicated region fallthrough
CT: control target
= control target key end

     0   :  { %s1962_s0 = inlined_call_operand.hbm [shape: f32[2,16,128], index: 0, kind: input, shape index: {}]   ;;  %s1963_s1 = inlined_call_operand.hbm [shape: f32[2,16,128], index: 1, kind: input, shape index: {}]   ;;  %s1964_s2 = inlined_call_operand.hbm [shape: f32[2,16,128], index: 2, kind: input, shape index: {}]   ;;  %s1965_s3 = inlined_call_operand.vmem [shape: f32[7,128], index: 3, kind: input, shape index: {}]   ;;  %s1966_s4 = inlined_call_operand.vmem [shape: f32[1,128], index: 4, kind: input, shape index: {}]   ;;  %s1967_s5 = inlined_call_operand.hbm [shape: bf16[128,128], index: 5, kind: input, shape index: {}]   ;;  %s1968_s6 = inlined_call_operand.vmem [shape: f32[1,128], index: 6, kind: input, shape index: {}]   ;;  %s1969_s7 = inlined_call_operand.hbm [shape: bf16[128,128], index: 7, kind: input, shape index: {}]   ;;  %s1970_s8 = inlined_call_operand.vmem [shape: f32[1,128], index: 8, kind: input, shape index: {}]   ;;  %s1971_s9 = inlined_call_operand.hbm [shape: f32[2,16,128], index: 9, kind: output, shape index: {}]  }
   0x1   :  { %1996 = sst [smem:[#allocation25_spill]] %s1962_s0 }
   0x2   :  { %1997 = sst [smem:[#allocation26_spill]] %s1963_s1 }
   0x3   :  { %1998 = sst [smem:[#allocation27_spill]] %s1967_s5 }
   0x4   :  { %1999 = sst [smem:[#allocation28_spill]] %s1969_s7 }
   0x5   :  { %2000 = sst [smem:[#allocation29_spill]] %s1970_s8 }
   0x6   :  { %2001 = sst [smem:[#allocation30_spill]] %s1971_s9 }
   0x7   :  { %14 = vsyncpa [#allocation4], 0 }
   0x8   :  { %16 = vsyncpa [#allocation4 + $0x1], 0 }
   0x9   :  { %17 = vsyncpa [#allocation7], 0 }
   0xa   :  { %19 = vsyncpa [#allocation7 + $0x1], 0 }
   0xb   :  { %20 = vsyncpa [#allocation10], 0 }
   0xc   :  { %21 = vsyncpa [#allocation5], 0 }
   0xd   :  { %23 = vsyncpa [#allocation5 + $0x1], 0  ;;  %s1590_s30 = smov 0   ;;  %s1592_s10 = smov 0  }
   0xe   :  { %s1594_s11 = smov 0   ;;  %s1596_s12 = smov 0  }
   0xf   :  { %s1598_s13 = smov 0   ;;  %s1600_s14 = smov 0  }
  0x10 LB: > { %2002 = sst [smem:[#allocation17_spill]] %s1504_s30  ;;  %s1621_s15 = sadd.s32 4294967295, %s1524_s14   ;;  %s1524_s14 = sphi %s1600_s14, %s29_s14   ;;  %s1520_s13 = sphi %s1598_s13, %s2048_s13   ;;  %s1516_s12 = sphi %s1596_s12, %s2047_s12   ;;  %s1512_s11 = sphi %s1594_s11, %s2046_s11   ;;  %s1508_s10 = sphi %s1592_s10, %s2050_s10   ;;  %s1504_s30 = sphi %s1590_s30, %s2049_s30  }
  0x11   : > { %2003 = sst [smem:[#allocation18_spill]] %s1512_s11  ;;  %s1047_s16 = sadd.s32 4294967294, %s1524_s14  }
  0x12   : > { %2004 = sst [smem:[#allocation19_spill]] %s1520_s13  ;;  %p63_p0 = scmp.ne.s32.totalorder %s1508_s10, %s1504_s30 }
  0x13   : > { %2005 = sst [smem:[#allocation20_spill]] %s1524_s14  ;;  %p1972_p1 = scmp.eq.s32.totalorder %s1621_s15, 0 }
  0x14   : > { %p293_p3 = scmp.eq.s32.totalorder %s1047_s16, 1  ;;  %p1048_p5 = scmp.ge.s32.totalorder %s1524_s14, 1 }
  0x15   : > { %p1630_p4 = por %p1972_p1, %p63_p0  ;;  %p300_p7 = scmp.lt.s32.totalorder %s1524_s14, 3 }
  0x16   : > { %p1635_p6 = por %p293_p3, %p63_p0  ;;  %s1526_s20 = smov [#allocation9]  }
  0x17   : > { %s2006_s17 = scalar_select %p1630_p4, 1, 0 }
  0x18   : > { %s2007_s18 = scalar_select %p1635_p6, 1, 0 }
  0x19   : > { %p1640_p8 = pnand %p1048_p5, %p300_p7  ;;  %s318_s21 = sshll.u32 %s1526_s20, 4  ;;  %s319_s21 = int_to_ptr.vmem [resolvable:$true] %s318_s21 }
  0x1a   : > { %2008 = sst [smem:[#allocation21_spill]] %s2007_s18  ;;  %s41_s23 = sadd.s32 1, %s1520_s13 }
  0x1b   : > { %s2009_s19 = scalar_select %p1640_p8, 1, 0 }
  0x1c   : > { %p1179_p9 = pneg %p1640_p8  ;;  %s2011_s5 = sld [smem:[#allocation27_spill]] }
  0x1e   : > { %p1649_p11 = pnand %p1179_p9, %p1972_p1 }
  0x20   : > { %s2010_s22 = scalar_select %p1649_p11, 1, 0 }
  0x21   : > { %p1984_p13 = pneg %p1649_p11 }
  0x22   : > { %s1288_s26 = scalar_lea.hbm %s2011_s5, 1024 }
  0x23   : > { %p1289_p12 = scmp.ne.s32.totalorder %s2011_s5, %s1288_s26  ;;  %p1295_p5 = scmp.lt.u32.totalorder %s1288_s26, %s2011_s5 }
  0x25   : > { %p1291_p0 = pnand %p1984_p13, %p1289_p12 }
  0x27   : > { %p1292_p3 = pneg %p1291_p0 }
  0x29   : > { %p1297_p7 = pnand %p1295_p5, %p1292_p3 }
  0x2b   : > { %1300 = shalt.err (!%p1297_p7)
}
  0x2c   : > { %s1301_s20 = scalar_lea.vmem %s319_s21, 1024  ;;  %p1309_p2 = scmp.lt.s32.totalorder %s319_s21, %s319_s21 }
  0x2d   : > { %p1302_p9 = scmp.ne.s32.totalorder %s319_s21, %s1301_s20  ;;  %p1310_p6 = scmp.lt.s32.totalorder %s1301_s20, %s1301_s20 }
  0x2f   : > { %p1304_p10 = pnand %p1302_p9, %p1984_p13  ;;  %p1311_p4 = por %p1310_p6, %p1309_p2 }
  0x31   : > { %p1305_p1 = pneg %p1304_p10 }
  0x33   : > { %p1312_p8 = pnand %p1311_p4, %p1305_p1 }
  0x35   : > { %1315 = shalt.err (!%p1312_p8)
}
  0x36   : > { %s1975_s24 = smov 64   ;;  %s1976_s25 = smov 4  }
  0x37   : > { %1182 = dma.hbm_to_vmem [thread:$0]  (!%p1649_p11), %s2011_s5, 1024, %s319_s21, [#allocation10], %s1975_s24, %s1975_s24, %s1976_s25  }
  0x38   : > { %p43_p1 = scmp.ge.s32.totalorder %s41_s23, 2  ;;  %s50_s28 = sadd.s32 1, %s1512_s11 }
  0x39   : > { %p57_p2 = scmp.ne.s32.totalorder %s1512_s11, %s1508_s10  ;;  %p58_p4 = scmp.eq.s32.totalorder %s1524_s14, 0 }
  0x3a   : > { %s2052_s23 = smov (%p43_p1, %s41_s23), 0  ;;  %p2013_p8 = scmp.eq.s32.totalorder %s1621_s15, 1 }
  0x3b   : > { %2012 = sst [smem:[#allocation22_spill]] %s2052_s23  ;;  %p59_p6 = por %p58_p4, %p57_p2 }
  0x3c   : > { %p1687_p10 = por %p2013_p8, %p57_p2  ;;  %s45_s16 = ssub.s32 %s1520_s13, %s2052_s23 }
  0x3d   : > { %p1202_p12 = scmp.lt.s32.totalorder %s1524_s14, 2  ;;  %p48_p0 = scmp.eq.s32.totalorder %s45_s16, 0 }
  0x3e   : > { %s2014_s29 = scalar_select %p1687_p10, 1, 0 }
  0x3f   : > { %s1695_s20 = sand.u32 1, %s1512_s11   ;;  %s1698_s21 = sshll.u32 %s1520_s13, 8 }
  0x40   : > { %2015 = sst [smem:[#allocation23_spill]] %s2014_s29  ;;  %p1700_p3 = pnand %p1202_p12, %p59_p6 }
  0x41   : > { %s1705_s27 = scalar_select %p48_p0, %s1512_s11, %s50_s28  }
  0x42   : > { %s2016_s26 = scalar_select %p1700_p3, 1, 0 }
  0x43   : > { %2017 = sst [smem:[#allocation24_spill]] %s1705_s27  ;;  %s2018_s0 = sld [smem:[#allocation25_spill]] }
  0x44   : > { %s374_s16 = sand.u32 1, %s1524_s14   ;;  %s1982_s23 = sshll.u32 %s1695_s20, 3 }
  0x45   : > { %s2019_s1 = sld [smem:[#allocation26_spill]]  ;;  %s378_s9 = scalar_lea.vmem [#allocation6], %s1982_s23 }
  0x46   : > { %s391_s28 = sshll.u32 %s378_s9, 4  ;;  %s1725_s27 = scalar_lea.sflag [#allocation7], %s374_s16  ;;  %s1723_s28 = int_to_ptr.vmem [resolvable:$true] %s391_s28 }
  0x47   : > { %p1731_p7 = pneg %p1700_p3 }
  0x49   : > { %s1711_s5 = scalar_lea.hbm %s2018_s0, %s1698_s21 }
  0x4a   : > { %s2020_s25 = scalar_select %p1731_p7, 1, 0 }
  0x4b   : > { %s1719_s13 = scalar_lea.hbm %s2019_s1, %s1698_s21  ;;  %s1321_s23 = scalar_lea.hbm %s2019_s1, 512 }
  0x4c   : > { %s1316_s24 = scalar_lea.hbm %s1719_s13, 128  ;;  %p1322_p2 = scmp.lt.u32.totalorder %s1719_s13, %s2019_s1 }
  0x4d   : > { %p1317_p5 = scmp.ne.s32.totalorder %s1719_s13, %s1316_s24  ;;  %p1323_p4 = scmp.lt.u32.totalorder %s1321_s23, %s1316_s24 }
  0x4e   : > { %p1325_p8 = scmp.lt.u32.totalorder %s1316_s24, %s1719_s13 }
  0x4f   : > { %p1319_p9 = pnand %p1731_p7, %p1317_p5  ;;  %p1324_p6 = por %p1323_p4, %p1322_p2 }
  0x51   : > { %p1320_p1 = pneg %p1319_p9  ;;  %p1326_p12 = por %p1325_p8, %p1324_p6 }
  0x53   : > { %p1327_p0 = pnand %p1326_p12, %p1320_p1 }
  0x55   : > { %1330 = shalt.err (!%p1327_p0)
}
  0x56   : > { %s1331_s16 = scalar_lea.vmem %s1723_s28, 128  ;;  %s1529_s30 = smov [#allocation6]  }
  0x57   : > { %p1332_p5 = scmp.ne.s32.totalorder %s1723_s28, %s1331_s16  ;;  %s1336_s18 = sshll.u32 %s1529_s30, 4  ;;  %s1337_s18 = int_to_ptr.vmem [resolvable:$false] %s1336_s18 }
  0x58   : > { %s1338_s11 = scalar_lea.vmem %s1337_s18, 256  ;;  %p1339_p10 = scmp.lt.s32.totalorder %s1723_s28, %s1337_s18 }
  0x59   : > { %p1334_p9 = pnand %p1332_p5, %p1731_p7  ;;  %p1340_p11 = scmp.lt.s32.totalorder %s1338_s11, %s1331_s16 }
  0x5b   : > { %p1335_p13 = pneg %p1334_p9  ;;  %p1341_p2 = por %p1340_p11, %p1339_p10 }
  0x5d   : > { %p1342_p4 = pnand %p1341_p2, %p1335_p13 }
  0x5f   : > { %1345 = shalt.err (!%p1342_p4)
}
  0x60   : > { %1192 = dma.hbm_to_vmem [thread:$0]  (!%p1700_p3), %s1719_s13, 128, %s1723_s28, %s1725_s27  }
  0x61   : > { %s1530_s23 = smov [#allocation11]   ;;  %s1052_s9 = sshll.u32 %s1695_s20, 4 }
  0x62   : > { %s334_s24 = sshll.u32 %s1530_s23, 4  ;;  %s2021_s7 = sld [smem:[#allocation28_spill]]  ;;  %s335_s24 = int_to_ptr.vmem [resolvable:$true] %s334_s24 }
  0x63   : > { %p2022_p13 = scmp.ne.s32.totalorder %s2010_s22, 0 }
  0x65   : > { %p2023_p10 = pneg %p2022_p13 }
  0x68   : > { %s1346_s18 = scalar_lea.hbm %s2021_s7, 1024 }
  0x69   : > { %p1347_p11 = scmp.ne.s32.totalorder %s2021_s7, %s1346_s18  ;;  %p1353_p8 = scmp.lt.u32.totalorder %s1346_s18, %s2021_s7 }
  0x6b   : > { %p1349_p1 = pnand %p1347_p11, %p2023_p10 }
  0x6d   : > { %p1350_p6 = pneg %p1349_p1 }
  0x6f   : > { %p1355_p12 = pnand %p1353_p8, %p1350_p6 }
  0x71   : > { %1358 = shalt.err (!%p1355_p12)
}
  0x72   : > { %s1359_s13 = scalar_lea.vmem %s335_s24, 1024  ;;  %p2024_p5 = pmov %p2023_p10 }
  0x73   : > { %p1360_p0 = scmp.ne.s32.totalorder %s335_s24, %s1359_s13  ;;  %p1367_p4 = scmp.lt.s32.totalorder %s335_s24, %s335_s24 }
  0x74   : > { %p1368_p3 = scmp.lt.s32.totalorder %s1359_s13, %s1359_s13 }
  0x75   : > { %p1362_p9 = pnand %p1360_p0, %p2024_p5 }
  0x76   : > { %p1369_p7 = por %p1368_p3, %p1367_p4 }
  0x77   : > { %p1363_p2 = pneg %p1362_p9 }
  0x79   : > { %p1370_p10 = pnand %p1369_p7, %p1363_p2 }
  0x7b   : > { %1373 = shalt.err (!%p1370_p10)
}
  0x7c   : > { %s2025_s1 = smov 4   ;;  %s2026_s28 = smov 64  }
  0x7d   : > { %1185 = dma.hbm_to_vmem [thread:$0]  (!%p2022_p13), %s2021_s7, 1024, %s335_s24, [#allocation10], %s2026_s28, %s2026_s28, %s2025_s1  }
  0x7e   : > { %s355_s23 = scalar_lea.vmem [#allocation3], %s1052_s9  ;;  %s352_s18 = scalar_lea.sflag [#allocation4], %s1695_s20 }
  0x7f   : > { %s364_s30 = sshll.u32 %s355_s23, 4  ;;  %s1374_s16 = scalar_lea.hbm %s1711_s5, 256  ;;  %s1779_s30 = int_to_ptr.vmem [resolvable:$true] %s364_s30 }
  0x80   : > { %p1375_p3 = scmp.ne.s32.totalorder %s1711_s5, %s1374_s16  ;;  %p2027_p7 = scmp.ne.s32.totalorder %s2020_s25, 0 }
  0x81   : > { %s1379_s13 = scalar_lea.hbm %s2018_s0, 512  ;;  %p1380_p6 = scmp.lt.u32.totalorder %s1711_s5, %s2018_s0 }
  0x82   : > { %p1377_p11 = pnand %p1375_p3, %p2027_p7  ;;  %p1381_p8 = scmp.lt.u32.totalorder %s1379_s13, %s1374_s16 }
  0x83   : > { %p1383_p12 = scmp.lt.u32.totalorder %s1374_s16, %s1711_s5 }
  0x84   : > { %p1378_p1 = pneg %p1377_p11  ;;  %p1382_p13 = por %p1381_p8, %p1380_p6 }
  0x86   : > { %p1384_p0 = por %p1383_p12, %p1382_p13 }
  0x88   : > { %p1385_p5 = pnand %p1384_p0, %p1378_p1 }
  0x8a   : > { %1388 = shalt.err (!%p1385_p5)
}
  0x8b   : > { %s1389_s24 = scalar_lea.vmem %s1779_s30, 256  ;;  %s1531_s9 = smov [#allocation3]  }
  0x8c   : > { %p1390_p9 = scmp.ne.s32.totalorder %s1779_s30, %s1389_s24  ;;  %s1394_s1 = sshll.u32 %s1531_s9, 4  ;;  %s1395_s1 = int_to_ptr.vmem [resolvable:$false] %s1394_s1 }
  0x8d   : > { %s1396_s28 = scalar_lea.vmem %s1395_s1, 512  ;;  %p1397_p10 = scmp.lt.s32.totalorder %s1779_s30, %s1395_s1 }
  0x8e   : > { %p1392_p2 = pnand %p1390_p9, %p2027_p7  ;;  %p1398_p3 = scmp.lt.s32.totalorder %s1396_s28, %s1389_s24 }
  0x90   : > { %p1393_p4 = pneg %p1392_p2  ;;  %p1399_p11 = por %p1398_p3, %p1397_p10 }
  0x92   : > { %p1400_p6 = pnand %p1399_p11, %p1393_p4 }
  0x94   : > { %1403 = shalt.err (!%p1400_p6)
}
  0x95   : > { %s1532_s23 = smov 128   ;;  %s1533_s16 = smov 8  }
  0x96   : > { %p2028_p1 = scmp.ne.s32.totalorder %s2016_s26, 0  ;;  %s1102_s22 = sadd.s32 128, %s1698_s21 }
  0x97   : > { %s2029_s11 = sshll.u32 %s1695_s20, 3  ;;  %s413_s9 = scalar_lea.hbm %s1964_s2, %s1102_s22 }
  0x98   : > { %1189 = dma.hbm_to_vmem [thread:$0]  (!%p2028_p1), %s1711_s5, 256, %s1779_s30, %s352_s18, %s1532_s23, %s1532_s23, %s1533_s16  }
  0x99   : > { %s402_s13 = scalar_lea.vmem [#allocation8], %s2029_s11  ;;  %s1404_s1 = scalar_lea.hbm %s413_s9, 128 }
  0x9a   : > { %s415_s14 = sshll.u32 %s402_s13, 4  ;;  %p1405_p8 = scmp.ne.s32.totalorder %s413_s9, %s1404_s1  ;;  %s416_s14 = int_to_ptr.vmem [resolvable:$true] %s415_s14 }
  0x9b   : > { %s1409_s7 = scalar_lea.hbm %s1964_s2, 512  ;;  %p1410_p0 = scmp.lt.u32.totalorder %s413_s9, %s1964_s2 }
  0x9c   : > { %p1407_p13 = pnand %p1405_p8, %p2027_p7  ;;  %p1411_p5 = scmp.lt.u32.totalorder %s1409_s7, %s1404_s1 }
  0x9d   : > { %p1413_p2 = scmp.lt.u32.totalorder %s1404_s1, %s413_s9 }
  0x9e   : > { %p1408_p12 = pneg %p1407_p13  ;;  %p1412_p9 = por %p1411_p5, %p1410_p0 }
  0xa0   : > { %p1414_p4 = por %p1413_p2, %p1412_p9 }
  0xa2   : > { %p1415_p10 = pnand %p1414_p4, %p1408_p12 }
  0xa4   : > { %1418 = shalt.err (!%p1415_p10)
}
  0xa5   : > { %s1419_s20 = scalar_lea.vmem %s416_s14, 128  ;;  %s1534_s21 = smov [#allocation8]  }
  0xa6   : > { %p1420_p3 = scmp.ne.s32.totalorder %s416_s14, %s1419_s20  ;;  %s1424_s30 = sshll.u32 %s1534_s21, 4  ;;  %s1425_s30 = int_to_ptr.vmem [resolvable:$false] %s1424_s30 }
  0xa7   : > { %s1426_s0 = scalar_lea.vmem %s1425_s30, 256  ;;  %p1427_p8 = scmp.lt.s32.totalorder %s416_s14, %s1425_s30 }
  0xa8   : > { %p1422_p11 = pnand %p1420_p3, %p2027_p7  ;;  %p1428_p13 = scmp.lt.s32.totalorder %s1426_s0, %s1419_s20 }
  0xaa   : > { %p1423_p6 = pneg %p1422_p11  ;;  %p1429_p1 = por %p1428_p13, %p1427_p8 }
  0xac   : > { %p1430_p0 = pnand %p1429_p1, %p1423_p6 }
  0xae   : > { %1433 = shalt.err (!%p1430_p0)
}
  0xaf   : > { %p2030_p5 = scmp.ne.s32.totalorder %s2016_s26, 0  ;;  %p2031_p12 = scmp.ne.s32.totalorder %s2009_s19, 0 }
  0xb0   : > { %s1827_s7 = sand.u32 (!%p2031_p12), 1, %s1508_s10   ;;  %p2032_p7 = scmp.ne.s32.totalorder (!%p2031_p12), %s2006_s17, 0 }
  0xb1   : > { %1195 = dma.hbm_to_vmem [thread:$0]  (!%p2030_p5), %s413_s9, 128, %s416_s14, %s1725_s27  }
  0xb2   : > { %424 = sbr.rel (%p2031_p12) target bundleno = 860 (0x35c), region = 56  ;;  %s1062_s8 = sshll.u32 (!%p2031_p12), %s1827_s7, 4 }
  0xb3   : > { %s427_s25 = scalar_lea.sflag (!%p2031_p12), [#allocation4], %s1827_s7  ;;  %s430_s18 = scalar_lea.vmem (!%p2031_p12), [#allocation3], %s1062_s8 }
  0xb9   : > { %1487 = dma.done.wait (%p2032_p7), %s427_s25, 256  }
  0xba   : > { %1489 = vsyncadd (%p2032_p7), %s427_s25, 4294967040  ;;  %s435_s19 = sand.u32 1, %s1621_s15   ;;  %s1063_s26 = sshll.u32 %s1827_s7, 3 }
  0xbb   : > { %s436_s27 = scalar_lea.sflag [#allocation7], %s435_s19  ;;  %s439_s23 = scalar_lea.vmem [#allocation6], %s1063_s26 }
  0xbc   : > { %1491 = dma.done.wait (%p2032_p7), %s436_s27, 256  }
  0xbd   : > { %1493 = vsyncadd (%p2032_p7), %s436_s27, 4294967040  ;;  %s448_s16 = scalar_lea.vmem [#allocation8], %s1063_s26  ;;  %p2033_p1 = scmp.eq.s32.totalorder %s1621_s15, 0 }
  0xbf   : > { %1495 = dma.done.wait (%p2033_p1), [#allocation10], 2048   ;;  %p2034_p9 = pmov %p2033_p1 }
  0xc0   : > { %v1535_v0 = vmov 0.0   ;;  %v1849_v1 = vld [vmem:[%s430_s18] sm:$0xff]  ;;  %v1851_v2 = vld [vmem:[%s430_s18 + $0x8] sm:$0xff]  ;;  %vm1536_vm0 = vmmov 0   ;;  %s2035_s27 = sld [smem:[#allocation29_spill]]  ;;  %s2036_s15 = sld [smem:[#allocation23_spill]] }
  0xc1   : > { %1497 = vsyncadd (%p2034_p9), [#allocation10], 4294965248  ;;  %1123 = vmatprep.subr.bf16.mxu0 %v1535_v0  ;;  %1143 = vmatprep.subr.bf16.mxu1 %v1535_v0  ;;  %v516_v3 = vld [vmem:[%s439_s23] sm:$0xff]  ;;  %520 = vst [vmem:[#allocation2 + $0x8] sm:$0xff] %v1849_v1  ;;  %v522_v5 = vld [vmem:[%s448_s16] sm:$0xff]  ;;  %s500_s23 = scalar_lea.vmem [#allocation12], %s1062_s8 }
  0xc2   : > { %v518_v4 = vmul.f32 0.0, %v516_v3  ;;  %521 = vst [vmem:[#allocation2 + $0x10] sm:$0xff] %v1851_v2  ;;  %v523_v6 = vmul.f32 0.0, %v522_v5  ;;  %v1264_v7 = vld [vmem:[#allocation9] sm:$0xff]   ;;  %v1265_v58 = vld [vmem:[#allocation9 + $0x8] sm:$0xff]   ;;  %v1266_v59 = vld [vmem:[#allocation9 + $0x10] sm:$0xff]   ;;  %1139 = vmatprep.mubr.msk.bf16.mxu0 %vm1536_vm0, %v1535_v0  ;;  %1159 = vmatprep.mubr.msk.bf16.mxu1 %vm1536_vm0, %v1535_v0 }
  0xc3   : > { %v1068_v8 = vld [vmem:[%s1965_s3] ss:$0 sm:$0xff]  ;;  %1124 = vmatpush3.bf16.msra.mxu0 %v1264_v7  ;;  %v1069_v9 = vld [vmem:[%s1965_s3 + $0x1] ss:$0 sm:$0xff]  ;;  %v1070_v10 = vld [vmem:[%s1965_s3 + $0x2] ss:$0 sm:$0xff] }
  0xc4   : > { %519 = vst [vmem:[#allocation2] sm:$0xff] %v518_v4  ;;  %524 = vst [vmem:[#allocation2 + $0x18] sm:$0xff] %v523_v6  ;;  %1125 = vmatprep.subr.bf16.mxu0 %v1535_v0  ;;  %v1071_v11 = vld [vmem:[%s1965_s3 + $0x3] ss:$0 sm:$0xff]  ;;  %v1072_v19 = vld [vmem:[%s1965_s3 + $0x4] ss:$0 sm:$0xff] }
  0xc5   : > { %v1073_v27 = vld [vmem:[%s1965_s3 + $0x5] ss:$0 sm:$0xff]  ;;  %v564_v29 = vmul.f32 %v1071_v11, %v1851_v2  ;;  %v563_v31 = vmul.f32 %v1071_v11, %v1849_v1  ;;  %v1074_v36 = vld [vmem:[%s1965_s3 + $0x6] ss:$0 sm:$0xff]  ;;  %v1075_v51 = vld [vmem:[%s1966_s4] ss:$0 sm:$0xff] }
  0xc6   : > { %v1267_v60 = vld [vmem:[#allocation9 + $0x18] sm:$0xff]   ;;  %v1268_v61 = vld [vmem:[#allocation9 + $0x20] sm:$0xff]   ;;  %v1269_v62 = vld [vmem:[#allocation9 + $0x28] sm:$0xff]   ;;  %s893_s16 = sshll.u32 %s500_s23, 4  ;;  %s1103_s17 = sshll.u32 %s1516_s12, 8  ;;  %s1907_s16 = int_to_ptr.vmem [resolvable:$true] %s893_s16 }
  0xc7   : > { %1126 = vmatpush3.bf16.msra.mxu0 %v1265_v58  ;;  %v1270_v63 = vld [vmem:[#allocation9 + $0x30] sm:$0xff]   ;;  %v1271_v3 = vld [vmem:[#allocation9 + $0x38] sm:$0xff]   ;;  %v1272_v4 = vld [vmem:[#allocation11] sm:$0xff]   ;;  %s2037_s13 = sld [smem:[#allocation30_spill]]  ;;  %s878_s12 = scalar_lea.sflag [#allocation5], %s1827_s7 }
  0xc8   : > { %1127 = vmatprep.subr.bf16.mxu0 %v1535_v0  ;;  %1144 = vmatpush3.bf16.msra.mxu1 %v1272_v4  ;;  %v1273_v5 = vld [vmem:[#allocation11 + $0x8] sm:$0xff]   ;;  %s1434_s8 = scalar_lea.vmem %s1907_s16, 256  ;;  %p2039_p4 = scmp.ne.s32.totalorder %s2036_s15, 0 }
  0xc9   : > { %v526_v12 = vld [vmem:[#allocation2 + $0xd] sm:$0xff]  ;;  %1145 = vmatprep.subr.bf16.mxu1 %v1535_v0  ;;  %p1435_p2 = scmp.ne.s32.totalorder %s1907_s16, %s1434_s8  ;;  %s1537_s24 = smov [#allocation12]  }
  0xca   : > { %v535_v13 = vld [vmem:[#allocation2 + $0xe] sm:$0xff]  ;;  %v533_v20 = vmul.f32 %v1068_v8, %v526_v12  ;;  %s1438_s9 = sshll.u32 %s1537_s24, 4  ;;  %s1439_s9 = int_to_ptr.vmem [resolvable:$false] %s1438_s9 }
  0xcb   : > { %v546_v14 = vld [vmem:[#allocation2 + $0xf] sm:$0xff]  ;;  %v525_v15 = vld [vmem:[#allocation2 + $0x5] sm:$0xff]  ;;  %v542_v21 = vmul.f32 %v1069_v9, %v535_v13  ;;  %1128 = vmatpush3.bf16.msra.mxu0 %v1266_v59  ;;  %p1436_p10 = pnand %p1435_p2, %p2039_p4  ;;  %s1440_s1 = scalar_lea.vmem %s1439_s9, 512 }
  0xcc   : > { %v534_v16 = vld [vmem:[#allocation2 + $0x6] sm:$0xff]  ;;  %v553_v22 = vmul.f32 %v1070_v10, %v546_v14  ;;  %v532_v23 = vmul.f32 %v1068_v8, %v525_v15  ;;  %v568_v32 = vld [vmem:[#allocation2 + $0x11] sm:$0xff]  ;;  %1129 = vmatprep.subr.bf16.mxu0 %v1535_v0  ;;  %1146 = vmatpush3.bf16.msra.mxu1 %v1273_v5  ;;  %p1441_p11 = scmp.lt.s32.totalorder %s1907_s16, %s1439_s9  ;;  %p1442_p6 = scmp.lt.s32.totalorder %s1440_s1, %s1434_s8 }
  0xcd   : > { %v545_v17 = vld [vmem:[#allocation2 + $0x7] sm:$0xff]  ;;  %v541_v24 = vmul.f32 %v1069_v9, %v534_v16  ;;  %v544_v28 = vadd.f32 %v542_v21, %v533_v20  ;;  %v579_v33 = vld [vmem:[#allocation2 + $0x12] sm:$0xff]  ;;  %v575_v38 = vmul.f32 %v1072_v19, %v568_v32  ;;  %1147 = vmatprep.subr.bf16.mxu1 %v1535_v0  ;;  %s2038_s29 = smov %s2037_s13  ;;  %s1912_s14 = scalar_lea.hbm %s2037_s13, %s1103_s17 }
  0xce   : > { %v567_v18 = vld [vmem:[#allocation2 + $0x9] sm:$0xff]  ;;  %v552_v25 = vmul.f32 %v1070_v10, %v545_v17  ;;  %v590_v34 = vld [vmem:[#allocation2 + $0x13] sm:$0xff]  ;;  %v586_v42 = vmul.f32 %v1073_v27, %v579_v33  ;;  %p1437_p3 = pneg %p1436_p10  ;;  %p1443_p8 = por %p1442_p6, %p1441_p11 }
  0xcf   : > { %v578_v26 = vld [vmem:[#allocation2 + $0xa] sm:$0xff]  ;;  %v543_v30 = vadd.f32 %v541_v24, %v532_v23  ;;  %v555_v37 = vadd.f32 %v553_v22, %v544_v28  ;;  %v574_v40 = vmul.f32 %v1072_v19, %v567_v18  ;;  %v597_v46 = vmul.f32 %v1074_v36, %v590_v34  ;;  %1130 = vmatpush3.bf16.msra.mxu0 %v1267_v60  ;;  %v1279_v34 = vld [vmem:[#allocation11 + $0x38] sm:$0xff]  }
  0xd0   : > { %v589_v35 = vld [vmem:[#allocation2 + $0xb] sm:$0xff]  ;;  %v585_v44 = vmul.f32 %v1073_v27, %v578_v26  ;;  %1131 = vmatprep.subr.bf16.mxu0 %v1535_v0  ;;  %p1444_p13 = pnand %p1443_p8, %p1437_p3 }
  0xd1   : > { %v554_v39 = vadd.f32 %v552_v25, %v543_v30  ;;  %v566_v41 = vadd.f32 %v564_v29, %v555_v37  ;;  %v596_v48 = vmul.f32 %v1074_v36, %v589_v35  ;;  %v1274_v29 = vld [vmem:[#allocation11 + $0x10] sm:$0xff]   ;;  %v1275_v30 = vld [vmem:[#allocation11 + $0x18] sm:$0xff]   ;;  %v1277_v32 = vld [vmem:[#allocation11 + $0x28] sm:$0xff]  }
  0xd2   : > { %1148 = vmatpush3.bf16.msra.mxu1 %v1274_v29  ;;  %v1278_v33 = vld [vmem:[#allocation11 + $0x30] sm:$0xff]   ;;  %v1076_v35 = vld [vmem:[%s1968_s6] ss:$0 sm:$0xff] }
  0xd3   : > { %v565_v43 = vadd.f32 %v563_v31, %v554_v39  ;;  %v577_v45 = vadd.f32 %v575_v38, %v566_v41  ;;  %1132 = vmatpush3.bf16.msra.mxu0 %v1268_v61  ;;  %1149 = vmatprep.subr.bf16.mxu1 %v1535_v0  ;;  %v1276_v31 = vld [vmem:[#allocation11 + $0x20] sm:$0xff]  }
  0xd4   : > { %1133 = vmatprep.subr.bf16.mxu0 %v1535_v0 }
  0xd5   : > { %v576_v47 = vadd.f32 %v574_v40, %v565_v43  ;;  %v588_v49 = vadd.f32 %v586_v42, %v577_v45 }
  0xd6   : > { %1150 = vmatpush3.bf16.msra.mxu1 %v1275_v30 }
  0xd7   : > { %v587_v50 = vadd.f32 %v585_v44, %v576_v47  ;;  %v599_v52 = vadd.f32 %v597_v46, %v588_v49  ;;  %1134 = vmatpush3.bf16.msra.mxu0 %v1269_v62  ;;  %1151 = vmatprep.subr.bf16.mxu1 %v1535_v0 }
  0xd8   : > { %1135 = vmatprep.subr.bf16.mxu0 %v1535_v0 }
  0xd9   : > { %v598_v53 = vadd.f32 %v596_v48, %v587_v50  ;;  %v608_v55 = vadd.f32 %v1075_v51, %v599_v52  ;;  %v1085_v52 = vld [vmem:[%s2035_s27] ss:$0 sm:$0xff] }
  0xda   : > { %1152 = vmatpush3.bf16.msra.mxu1 %v1276_v31 }
  0xdb   : > { %v607_v54 = vadd.f32 %v1075_v51, %v598_v53  ;;  %v614_v57 = vmul.f32 %v608_v55, %v608_v55  ;;  %1136 = vmatpush3.bf16.msra.mxu0 %v1270_v63  ;;  %1153 = vmatprep.subr.bf16.mxu1 %v1535_v0 }
  0xdc   : > { %1137 = vmatprep.subr.bf16.mxu0 %v1535_v0 }
  0xdd   : > { %609 = vadd.xlane.f32.xlu0 %v607_v54  ;;  %v613_v56 = vmul.f32 %v607_v54, %v607_v54 }
  0xde   : > { %1154 = vmatpush3.bf16.msra.mxu1 %v1277_v32 }
  0xdf   : > { %615 = vadd.xlane.f32.xlu1 %v613_v56  ;;  %1138 = vmatpush3.bf16.msra.mxu0 %v1271_v3 }
  0xe0   : > { %1155 = vmatprep.subr.bf16.mxu1 %v1535_v0 }
  0xe1   : > { %611 = vadd.xlane.f32.xlu0 %v608_v55 }
  0xe2   : > { %1156 = vmatpush3.bf16.msra.mxu1 %v1278_v33 }
  0xe3   : > { %617 = vadd.xlane.f32.xlu1 %v614_v57  ;;  %1157 = vmatprep.subr.bf16.mxu1 %v1535_v0 }
  0xe6   : > { %1158 = vmatpush3.bf16.msra.mxu1 %v1279_v34 }
 0x16a   : > { %v610_v6 = vpop.xlane.xlu0 %609 }
 0x16b   : > { %v619_v7 = vmul.f32 0.03125, %v610_v6 }
 0x16c   : > { %v616_v8 = vpop.xlane.xlu1 %615 }
 0x16d   : > { %v623_v9 = vmul.f32 %v619_v7, %v619_v7  ;;  %v621_v10 = vmul.f32 0.03125, %v616_v8  ;;  %v629_v23 = vsub.f32 %v607_v54, %v619_v7 }
 0x16e   : > { %v612_v11 = vpop.xlane.xlu0 %611 }
 0x16f   : > { %v625_v12 = vsub.f32 %v621_v10, %v623_v9  ;;  %v620_v13 = vmul.f32 0.03125, %v612_v11 }
 0x170   : > { %v618_v14 = vpop.xlane.xlu1 %617 }
 0x171   : > { %v627_v15 = vmax.f32 %v625_v12, 0.0  ;;  %v624_v16 = vmul.f32 %v620_v13, %v620_v13  ;;  %v622_v17 = vmul.f32 0.03125, %v618_v14  ;;  %v630_v24 = vsub.f32 %v608_v55, %v620_v13 }
 0x173   : > { %v631_v18 = vadd.f32 1e-06, %v627_v15  ;;  %v626_v19 = vsub.f32 %v622_v17, %v624_v16 }
 0x175   : > { %v628_v20 = vmax.f32 %v626_v19, 0.0  ;;  %1280 = vrsqrt.f32 %v631_v18 }
 0x177   : > { %v632_v21 = vadd.f32 1e-06, %v628_v20 }
 0x179   : > { %1282 = vrsqrt.f32 %v632_v21 }
 0x17f   : > { %v1281_v22 = vpop.eup %1280 }
 0x180   : > { %v635_v26 = vmul.f32 %v1281_v22, %v629_v23 }
 0x183   : > { %v1283_v25 = vpop.eup %1282 }
 0x184   : > { %v636_v27 = vmul.f32 %v1283_v25, %v630_v24 }
 0x186   : > { %v637_v28 = vpack.c.bf16 %v636_v27, %v635_v26 }
 0x188   : > { %1140 = vmatmul.mubr.bf16.vlgmr.msra.gmra.mrb[0].mxu0 %v637_v28 }
 0x25b   : > { %v743_v36 = vpop.f32.mrb[0].mxu0 }
 0x25c   : > { %v744_v37 = vadd.f32 %v1076_v35, %v743_v36  ;;  %v1141_v38 = vpop.f32.mrb[1].mxu0 }
 0x25d   : > { %v746_v39 = vpop.f32.mrb[2].mxu0 }
 0x25e   : > { %v752_v40 = vmul.f32 0.70710677, %v744_v37  ;;  %v747_v41 = vadd.f32 %v1076_v35, %v746_v39  ;;  %v1142_v42 = vpop.f32.mrb[3].mxu0  ;;  %v750_v46 = vmul.f32 0.5, %v744_v37 }
 0x260   : > { %1284 = verf.f32 %v752_v40  ;;  %v753_v43 = vmul.f32 0.70710677, %v747_v41  ;;  %v751_v47 = vmul.f32 0.5, %v747_v41 }
 0x262   : > { %1286 = verf.f32 %v753_v43 }
 0x26a   : > { %v1285_v44 = vpop.eup %1284 }
 0x26b   : > { %v756_v0 = vadd.f32 1.0, %v1285_v44 }
 0x26c   : > { %v1287_v45 = vpop.eup %1286 }
 0x26d   : > { %v757_v48 = vadd.f32 1.0, %v1287_v45  ;;  %v758_v49 = vmul.f32 %v756_v0, %v750_v46 }
 0x26f   : > { %v759_v50 = vmul.f32 %v757_v48, %v751_v47 }
 0x271   : > { %v760_v51 = vpack.c.bf16 %v759_v50, %v758_v49 }
 0x273   : > { %1160 = vmatmul.mubr.bf16.vlgmr.msra.gmra.mrb[0].mxu1 %v760_v51 }
 0x346   : > { %v866_v53 = vpop.f32.mrb[0].mxu1 }
 0x347   : > { %v867_v54 = vadd.f32 %v1085_v52, %v866_v53  ;;  %v1161_v55 = vpop.f32.mrb[1].mxu1 }
 0x348   : > { %v869_v56 = vpop.f32.mrb[2].mxu1 }
 0x349   : > { %v873_v57 = vadd.f32 %v867_v54, %v1849_v1  ;;  %v870_v58 = vadd.f32 %v1085_v52, %v869_v56  ;;  %v1162_v59 = vpop.f32.mrb[3].mxu1 }
 0x34b   : > { %875 = vst [vmem:[%s500_s23] sm:$0xff] %v873_v57  ;;  %v874_v60 = vadd.f32 %v870_v58, %v1851_v2 }
 0x34d   : > { %876 = vst [vmem:[%s500_s23 + $0x8] sm:$0xff] %v874_v60 }
 0x34e   : > { %1447 = shalt.err (!%p1444_p13)
}
 0x34f   : > { %s1448_s28 = scalar_lea.hbm %s1912_s14, 256  ;;  %s1452_s21 = scalar_lea.hbm %s2038_s29, 512 }
 0x350   : > { %p1449_p0 = scmp.ne.s32.totalorder %s1912_s14, %s1448_s28  ;;  %p1453_p7 = scmp.lt.u32.totalorder %s1912_s14, %s2038_s29 }
 0x351   : > { %p1454_p1 = scmp.lt.u32.totalorder %s1452_s21, %s1448_s28  ;;  %p1456_p2 = scmp.lt.u32.totalorder %s1448_s28, %s1912_s14 }
 0x352   : > { %p1450_p5 = pnand %p1449_p0, %p2039_p4 }
 0x353   : > { %p1455_p9 = por %p1454_p1, %p1453_p7 }
 0x354   : > { %p1451_p12 = pneg %p1450_p5 }
 0x355   : > { %p1457_p10 = por %p1456_p2, %p1455_p9 }
 0x357   : > { %p1458_p3 = pnand %p1457_p10, %p1451_p12 }
 0x359   : > { %1461 = shalt.err (!%p1458_p3)
}
 0x35a   : > { %s1538_s25 = smov 128   ;;  %s1539_s18 = smov 8  }
 0x35b   : > { %1177 = dma.vmem_to_hbm [thread:$0]  (%p2039_p4), %s1907_s16, 256, %s1912_s14, %s878_s12, %s1538_s25, %s1538_s25, %s1539_s18  }
 0x35c PF: > { %s2040_s19 = sld [smem:[#allocation17_spill]]  ;;  %s2041_s26 = sld [smem:[#allocation21_spill]] }
 0x35d   : > { %s2042_s27 = sld [smem:[#allocation20_spill]] }
 0x362   : > { %s908_s23 = sand.u32 1, %s2040_s19   ;;  %p2043_p11 = scmp.ne.s32.totalorder %s2041_s26, 0 }
 0x363   : > { %p2044_p6 = scmp.ge.s32.totalorder %s2042_s27, 2  ;;  %s909_s17 = scalar_lea.sflag [#allocation5], %s908_s23 }
 0x365   : > { %p1197_p8 = pnand %p2044_p6, %p2043_p11 }
 0x367   : > { %1499 = dma.done.wait (!%p1197_p8), %s909_s17, 256  }
 0x368   : > { %1501 = vsyncadd (!%p1197_p8), %s909_s17, 4294967040  ;;  %s29_s14 = sadd.s32 1, %s2042_s27   ;;  %s2045_s22 = sld [smem:[#allocation18_spill]] }
 0x369   : > { %p26_p13 = scmp.ge.s32.totalorder %s29_s14, 4   ;;  %s2046_s11 = sld [smem:[#allocation24_spill]] }
 0x36a   : > { %s2047_s12 = sld [smem:[#allocation19_spill]]  ;;  %s2048_s13 = sld [smem:[#allocation22_spill]] }
 0x36b   : > { %s2049_s30 = smov %s1508_s10  ;;  %28 = sbr.rel (!%p26_p13) target bundleno = 16 (0x10), region = 133 }
 0x36e   : > { %s2050_s10 = smov %s2045_s22 }
 0x372   :  { %914 = vsyncpa [#allocation4], 1 }
 0x373   :  { %916 = vsyncpa [#allocation4 + $0x1], 1 }
 0x374   :  { %917 = vsyncpa [#allocation7], 1 }
 0x375   :  { %919 = vsyncpa [#allocation7 + $0x1], 1 }
 0x376   :  { %920 = vsyncpa [#allocation10], 1 }
 0x377   :  { %921 = vsyncpa [#allocation5], 1 }
 0x378   :  { %923 = vsyncpa [#allocation5 + $0x1], 1 }

</bundles_post_ra>
